<compile_context>
chip_gen: v5e
topology: v5e:2x2
jax: 0.10.0
libtpu: 0.0.40
codegen_flags: <defaults>
</compile_context>

<pallas_src>
import functools
import numpy as np
import jax
import jax.numpy as jnp
from jax.experimental import pallas as pl
from jax.experimental.pallas import tpu as pltpu

HIDDEN = 128
LANE = 128
TB_MAX = 1024   # batch-tile cap; 512-1024 rows hits ~85% of HBM roofline


def _round_up(x, m):
    return -(-x // m) * m


def _is_v5_mxu():
    """True on chips with a 128-wide MXU (v5*): de-fuse block-diagonal heads."""
    try:
        kind = jax.devices()[0].device_kind.lower()
    except Exception:
        return False
    return "v5" in kind


# ----------------------------------------------------------------------------
# Kernel: whole MLP in one invocation (weights << VMEM).
#   x_ref   : [TB, 128]     bf16  state, obs zero-padded to 128 lanes
#   wfe_ref : [4, 128, 128] bf16  feature-extractor weights ([in, out] layout;
#                                 layer 0 rows >= obs_dim are zero)
#   wh_ref  : [3, 256, 256] bf16  fused actor|critic head weights
#   b_ref   : [8, 256]      f32   packed biases
#   out_ref : [TB, 128]     f32   logits in lanes [0, A), value at lane A
# ----------------------------------------------------------------------------
def _policy_kernel(x_ref, wfe_ref, wh_ref, b_ref, out_ref, *, split_heads):
    b = b_ref[...]                                   # [8, 256] f32, loaded once
    h = x_ref[...]                                   # [TB, 128] bf16 already

    # feature extractor: 4 x (Linear 128->128, ReLU), all MXU pushes
    for i in range(4):
        y = jnp.dot(h, wfe_ref[i], preferred_element_type=jnp.float32)
        h = jnp.maximum(y + b[i:i + 1, :HIDDEN], 0.0).astype(jnp.bfloat16)

    # fused head layer 1: actor|critic hidden side by side -> one 256-wide matmul
    y = jnp.dot(h, wh_ref[0, :HIDDEN, :], preferred_element_type=jnp.float32)
    g = jnp.maximum(y + b[4:5, :], 0.0).astype(jnp.bfloat16)          # [TB, 256]

    if split_heads:
        # v5e path (4x128^2 MXU): block-diagonal layer 2 as two 128^2 matmuls,
        # output layer as two 128^2 matmuls into the 128-lane slab.
        ya = jnp.dot(g[:, :HIDDEN], wh_ref[1, :HIDDEN, :HIDDEN],
                     preferred_element_type=jnp.float32)
        yc = jnp.dot(g[:, HIDDEN:], wh_ref[1, HIDDEN:, HIDDEN:],
                     preferred_element_type=jnp.float32)
        ga = jnp.maximum(ya + b[5:6, :HIDDEN], 0.0).astype(jnp.bfloat16)
        gc = jnp.maximum(yc + b[5:6, HIDDEN:], 0.0).astype(jnp.bfloat16)
        y = (jnp.dot(ga, wh_ref[2, :HIDDEN, :HIDDEN],
                     preferred_element_type=jnp.float32)
             + jnp.dot(gc, wh_ref[2, HIDDEN:, :HIDDEN],
                       preferred_element_type=jnp.float32))
    else:
        # v6e/v7x path (2x256^2 MXU): keep the fused block-diagonal 256^2 matmul.
        y = jnp.dot(g, wh_ref[1], preferred_element_type=jnp.float32)
        g = jnp.maximum(y + b[5:6, :], 0.0).astype(jnp.bfloat16)
        # output layer: only the first 128 lanes are meaningful -> 256x128 matmul
        y = jnp.dot(g, wh_ref[2, :, :HIDDEN], preferred_element_type=jnp.float32)

    out_ref[...] = y + b[6:7, :HIDDEN]


# ----------------------------------------------------------------------------
# Wrapper (traceable; call it from inside the caller's jit on the rollout path)
# ----------------------------------------------------------------------------
def policy_forward(state, packed_params, action_dim):
    """state: [B, obs_dim] (or [obs_dim]); returns (action_logits, state_value)."""
    w_fe, w_heads, biases = packed_params
    if state.ndim == 1:
        state = state[None, :]                       # mirrors torch's unsqueeze(0)
    B, obs_dim = state.shape
    assert obs_dim <= LANE, "obs_dim > 128 not supported by this packing"
    assert action_dim + 1 <= HIDDEN, "action_dim + 1 must fit in the 128-lane slab"

    # pad batch only to the bf16 sublane multiple (16); no TB rounding waste
    B_pad = _round_up(max(B, 1), 16)
    if B_pad > TB_MAX:
        TB = TB_MAX                                  # cdiv grid; partial last tile OK
    elif B_pad >= 256:
        # two tiles so the 'parallel' axis shards across v7x's two TensorCores
        TB = _round_up(-(-B_pad // 2), 16)
        B_pad = 2 * TB                               # at most 16 extra rows
    else:
        TB = B_pad
    grid = (pl.cdiv(B_pad, TB),)

    # lane-dense, zero-padded bf16 state slab (layout plumbing, not compute)
    x = jnp.zeros((B_pad, LANE), jnp.bfloat16).at[:B, :obs_dim].set(
        state.astype(jnp.bfloat16))

    flops = 2 * B_pad * (4 * 128 * 128 + 128 * 256 + 256 * 256 + 256 * 128)
    bytes_accessed = (x.size * 2 + w_fe.size * 2 + w_heads.size * 2
                      + biases.size * 4 + B_pad * HIDDEN * 4)

    kernel = functools.partial(_policy_kernel, split_heads=_is_v5_mxu())

    out = pl.pallas_call(
        kernel,
        out_shape=jax.ShapeDtypeStruct((B_pad, HIDDEN), jnp.float32),
        grid=grid,
        in_specs=[
            pl.BlockSpec((TB, LANE), lambda i: (i, 0)),
            pl.BlockSpec((4, HIDDEN, HIDDEN), lambda i: (0, 0, 0)),        # resident
            pl.BlockSpec((3, 2 * HIDDEN, 2 * HIDDEN), lambda i: (0, 0, 0)),
            pl.BlockSpec((8, 2 * HIDDEN), lambda i: (0, 0)),
        ],
        out_specs=pl.BlockSpec((TB, HIDDEN), lambda i: (i, 0)),
        compiler_params=pltpu.CompilerParams(dimension_semantics=("parallel",)),
        cost_estimate=pl.CostEstimate(flops=int(flops), transcendentals=0,
                                      bytes_accessed=int(bytes_accessed)),
    )(x, w_fe, w_heads, biases)

    # NOTE: rows >= B of `out` are padded-batch garbage; do not reuse raw `out`.
    action_logits = out[:B, :action_dim]
    state_value = out[:B, action_dim:action_dim + 1]
    return action_logits, state_value


# ----------------------------------------------------------------------------
# Orthogonal init (gain sqrt(2), zero bias) matching nn.init.orthogonal_.
# ----------------------------------------------------------------------------
def _orthogonal(key, out_features, in_features, gain):
    rows, cols = out_features, in_features
    a = jax.random.normal(key, (rows, cols), dtype=jnp.float32)
    flat_t = rows < cols
    if flat_t:
        a = a.T
    q, r = jnp.linalg.qr(a)
    d = jnp.sign(jnp.diagonal(r))
    q = q * d[None, :]
    if flat_t:
        q = q.T
    return gain * q                                  # [out, in], torch convention


def init_policy_params(key, obs_dim, action_dim, hidden=HIDDEN):
    """Per-layer (W[in,out] f32, b[out] f32) in order: fe1..fe4, a1..a3, c1..c3."""
    gain = float(np.sqrt(2.0))
    layer_dims = [
        (obs_dim, hidden), (hidden, hidden), (hidden, hidden), (hidden, hidden),
        (hidden, hidden), (hidden, hidden), (hidden, action_dim),
        (hidden, hidden), (hidden, hidden), (hidden, 1),
    ]
    keys = jax.random.split(key, len(layer_dims))
    raw = []
    for k, (d_in, d_out) in zip(keys, layer_dims):
        w = jnp.asarray(_orthogonal(k, d_out, d_in, gain).T, dtype=jnp.float32)
        b = jnp.zeros((d_out,), dtype=jnp.float32)
        raw.append((w, b))
    return raw


def pack_params(raw, obs_dim, action_dim, hidden=HIDDEN):
    """Pack 10 layers into 3 arrays: w_fe [4,128,128] bf16, w_heads [3,256,256]
    bf16 (actor/critic fused), biases [8,256] f32."""
    H = hidden
    assert action_dim + 1 <= H, "action_dim + 1 must fit in the 128-lane slab"
    (fw1, fb1), (fw2, fb2), (fw3, fb3), (fw4, fb4) = raw[0:4]
    (aw1, ab1), (aw2, ab2), (aw3, ab3) = raw[4:7]
    (cw1, cb1), (cw2, cb2), (cw3, cb3) = raw[7:10]

    w0 = jnp.zeros((H, H), jnp.float32).at[:obs_dim, :].set(fw1)
    w_fe = jnp.stack([w0, fw2, fw3, fw4]).astype(jnp.bfloat16)

    h1 = jnp.zeros((2 * H, 2 * H), jnp.float32)
    h1 = h1.at[:H, :H].set(aw1).at[:H, H:].set(cw1)            # actor|critic side by side
    h2 = jnp.zeros((2 * H, 2 * H), jnp.float32)
    h2 = h2.at[:H, :H].set(aw2).at[H:, H:].set(cw2)            # block-diagonal
    h3 = jnp.zeros((2 * H, 2 * H), jnp.float32)
    h3 = h3.at[:H, :action_dim].set(aw3)                       # logits lanes [0, A)
    h3 = h3.at[H:, action_dim:action_dim + 1].set(cw3)         # value at lane A
    w_heads = jnp.stack([h1, h2, h3]).astype(jnp.bfloat16)

    biases = jnp.zeros((8, 2 * H), jnp.float32)
    biases = biases.at[0, :H].set(fb1).at[1, :H].set(fb2)
    biases = biases.at[2, :H].set(fb3).at[3, :H].set(fb4)
    biases = biases.at[4, :H].set(ab1).at[4, H:].set(cb1)
    biases = biases.at[5, :H].set(ab2).at[5, H:].set(cb2)
    biases = biases.at[6, :action_dim].set(ab3).at[6, action_dim].set(cb3[0])
    return (w_fe, w_heads, biases)


if __name__ == "__main__":
    key = jax.random.PRNGKey(0)
    k_param, k_state = jax.random.split(key)

    # Small shapes consistent with a Discrete gym env (LunarLander-ish):
    batch, obs_dim, action_dim = 2, 8, 4

    raw_params = init_policy_params(k_param, obs_dim, action_dim)
    packed = pack_params(raw_params, obs_dim, action_dim)
    state = jax.random.normal(k_state, (batch, obs_dim), dtype=jnp.float32)

    # Single jitted dispatch around the wrapper (rollout-path recommendation).
    fwd = jax.jit(policy_forward, static_argnums=(2,))
    action_logits, state_value = fwd(state, packed, action_dim)
    jax.block_until_ready((action_logits, state_value))

    # Pure-JAX reference with identical bf16 quantization points (weights and
    # activations bf16, f32 accumulation) to validate the fused/packed kernel.
    def ref_forward(x, raw):
        def lin(h, w, b):
            hb = h.astype(jnp.bfloat16).astype(jnp.float32)
            wb = w.astype(jnp.bfloat16).astype(jnp.float32)
            return jnp.dot(hb, wb, preferred_element_type=jnp.float32) + b
        h = x
        for i in range(4):
            h = jnp.maximum(lin(h, *raw[i]), 0.0)
        a = h
        for i in (4, 5):
            a = jnp.maximum(lin(a, *raw[i]), 0.0)
        a = lin(a, *raw[6])
        c = h
        for i in (7, 8):
            c = jnp.maximum(lin(c, *raw[i]), 0.0)
        c = lin(c, *raw[9])
        return a, c

    ref_a, ref_v = ref_forward(state, raw_params)
    np.testing.assert_allclose(np.asarray(action_logits), np.asarray(ref_a),
                               rtol=1e-2, atol=1e-2)
    np.testing.assert_allclose(np.asarray(state_value), np.asarray(ref_v),
                               rtol=1e-2, atol=1e-2)

    assert action_logits.shape == (batch, action_dim)
    assert state_value.shape == (batch, 1)
    print("KERNEL_OK")
</pallas_src>

<mosaic_0001>
module attributes {stable_mosaic.version = 11 : i64} {
  func.func @_policy_kernel(%arg0: i32, %arg1: memref<16x128xbf16, #tpu.memory_space<vmem>>, %arg2: memref<4x128x128xbf16, #tpu.memory_space<vmem>>, %arg3: memref<3x256x256xbf16, #tpu.memory_space<vmem>>, %arg4: memref<8x256xf32, #tpu.memory_space<vmem>>, %arg5: memref<16x128xf32, #tpu.memory_space<vmem>>) attributes {dimension_semantics = [#tpu.dimension_semantics<parallel>], iteration_bounds = array<i64: 1>, scalar_prefetch = 0 : i64, scratch_operands = 0 : i64, tpu.core_type = #tpu.core_type<tc>, window_params = [{transform_indices = @transform_0, window_bounds = array<i64: 16, 128>}, {pipeline_mode = #tpu.pipeline_mode<synchronous>, transform_indices = @transform_1, window_bounds = array<i64: 4, 128, 128>}, {pipeline_mode = #tpu.pipeline_mode<synchronous>, transform_indices = @transform_2, window_bounds = array<i64: 3, 256, 256>}, {pipeline_mode = #tpu.pipeline_mode<synchronous>, transform_indices = @transform_3, window_bounds = array<i64: 8, 256>}, {transform_indices = @transform_4, window_bounds = array<i64: 16, 128>}]} {
    %c0 = arith.constant 0 : index
    %c0_0 = arith.constant 0 : index
    %0 = vector.load %arg4[%c0, %c0_0] : memref<8x256xf32, #tpu.memory_space<vmem>>, vector<8x256xf32>
    %c0_1 = arith.constant 0 : index
    %c0_2 = arith.constant 0 : index
    %1 = vector.load %arg1[%c0_1, %c0_2] : memref<16x128xbf16, #tpu.memory_space<vmem>>, vector<16x128xbf16>
    %c0_3 = arith.constant 0 : index
    %c0_4 = arith.constant 0 : index
    %c0_5 = arith.constant 0 : index
    %2 = vector.load %arg2[%c0_3, %c0_4, %c0_5] : memref<4x128x128xbf16, #tpu.memory_space<vmem>>, vector<1x128x128xbf16>
    %3 = vector.shape_cast %2 : vector<1x128x128xbf16> to vector<128x128xbf16>
    %cst = arith.constant dense<0.000000e+00> : vector<16x128xf32>
    %4 = tpu.matmul %1, %3, %cst {dimension_numbers = #tpu.dot_dimension_numbers<[1], [0], [0], [1], [0, 0, 1, 1], [], []>} : vector<16x128xbf16>, vector<128x128xbf16>, vector<16x128xf32> -> vector<16x128xf32>
    %5 = vector.extract_strided_slice %0 {offsets = [0, 0], sizes = [1, 128], strides = [1, 1]} : vector<8x256xf32> to vector<1x128xf32>
    %6 = vector.broadcast %5 : vector<1x128xf32> to vector<16x128xf32>
    %7 = arith.addf %4, %6 : vector<16x128xf32>
    %cst_6 = arith.constant 0.000000e+00 : f32
    %8 = vector.broadcast %cst_6 : f32 to vector<16x128xf32>
    %9 = arith.maximumf %7, %8 : vector<16x128xf32>
    %10 = arith.truncf %9 : vector<16x128xf32> to vector<16x128xbf16>
    %c1 = arith.constant 1 : index
    %c0_7 = arith.constant 0 : index
    %c0_8 = arith.constant 0 : index
    %11 = vector.load %arg2[%c1, %c0_7, %c0_8] : memref<4x128x128xbf16, #tpu.memory_space<vmem>>, vector<1x128x128xbf16>
    %12 = vector.shape_cast %11 : vector<1x128x128xbf16> to vector<128x128xbf16>
    %cst_9 = arith.constant dense<0.000000e+00> : vector<16x128xf32>
    %13 = tpu.matmul %10, %12, %cst_9 {dimension_numbers = #tpu.dot_dimension_numbers<[1], [0], [0], [1], [0, 0, 1, 1], [], []>} : vector<16x128xbf16>, vector<128x128xbf16>, vector<16x128xf32> -> vector<16x128xf32>
    %14 = vector.extract_strided_slice %0 {offsets = [1, 0], sizes = [1, 128], strides = [1, 1]} : vector<8x256xf32> to vector<1x128xf32>
    %15 = vector.broadcast %14 : vector<1x128xf32> to vector<16x128xf32>
    %16 = arith.addf %13, %15 : vector<16x128xf32>
    %cst_10 = arith.constant 0.000000e+00 : f32
    %17 = vector.broadcast %cst_10 : f32 to vector<16x128xf32>
    %18 = arith.maximumf %16, %17 : vector<16x128xf32>
    %19 = arith.truncf %18 : vector<16x128xf32> to vector<16x128xbf16>
    %c2 = arith.constant 2 : index
    %c0_11 = arith.constant 0 : index
    %c0_12 = arith.constant 0 : index
    %20 = vector.load %arg2[%c2, %c0_11, %c0_12] : memref<4x128x128xbf16, #tpu.memory_space<vmem>>, vector<1x128x128xbf16>
    %21 = vector.shape_cast %20 : vector<1x128x128xbf16> to vector<128x128xbf16>
    %cst_13 = arith.constant dense<0.000000e+00> : vector<16x128xf32>
    %22 = tpu.matmul %19, %21, %cst_13 {dimension_numbers = #tpu.dot_dimension_numbers<[1], [0], [0], [1], [0, 0, 1, 1], [], []>} : vector<16x128xbf16>, vector<128x128xbf16>, vector<16x128xf32> -> vector<16x128xf32>
    %23 = vector.extract_strided_slice %0 {offsets = [2, 0], sizes = [1, 128], strides = [1, 1]} : vector<8x256xf32> to vector<1x128xf32>
    %24 = vector.broadcast %23 : vector<1x128xf32> to vector<16x128xf32>
    %25 = arith.addf %22, %24 : vector<16x128xf32>
    %cst_14 = arith.constant 0.000000e+00 : f32
    %26 = vector.broadcast %cst_14 : f32 to vector<16x128xf32>
    %27 = arith.maximumf %25, %26 : vector<16x128xf32>
    %28 = arith.truncf %27 : vector<16x128xf32> to vector<16x128xbf16>
    %c3 = arith.constant 3 : index
    %c0_15 = arith.constant 0 : index
    %c0_16 = arith.constant 0 : index
    %29 = vector.load %arg2[%c3, %c0_15, %c0_16] : memref<4x128x128xbf16, #tpu.memory_space<vmem>>, vector<1x128x128xbf16>
    %30 = vector.shape_cast %29 : vector<1x128x128xbf16> to vector<128x128xbf16>
    %cst_17 = arith.constant dense<0.000000e+00> : vector<16x128xf32>
    %31 = tpu.matmul %28, %30, %cst_17 {dimension_numbers = #tpu.dot_dimension_numbers<[1], [0], [0], [1], [0, 0, 1, 1], [], []>} : vector<16x128xbf16>, vector<128x128xbf16>, vector<16x128xf32> -> vector<16x128xf32>
    %32 = vector.extract_strided_slice %0 {offsets = [3, 0], sizes = [1, 128], strides = [1, 1]} : vector<8x256xf32> to vector<1x128xf32>
    %33 = vector.broadcast %32 : vector<1x128xf32> to vector<16x128xf32>
    %34 = arith.addf %31, %33 : vector<16x128xf32>
    %cst_18 = arith.constant 0.000000e+00 : f32
    %35 = vector.broadcast %cst_18 : f32 to vector<16x128xf32>
    %36 = arith.maximumf %34, %35 : vector<16x128xf32>
    %37 = arith.truncf %36 : vector<16x128xf32> to vector<16x128xbf16>
    %c0_19 = arith.constant 0 : index
    %c0_20 = arith.constant 0 : index
    %c0_21 = arith.constant 0 : index
    %38 = vector.load %arg3[%c0_19, %c0_20, %c0_21] : memref<3x256x256xbf16, #tpu.memory_space<vmem>>, vector<1x128x256xbf16>
    %39 = vector.shape_cast %38 : vector<1x128x256xbf16> to vector<128x256xbf16>
    %cst_22 = arith.constant dense<0.000000e+00> : vector<16x256xf32>
    %40 = tpu.matmul %37, %39, %cst_22 {dimension_numbers = #tpu.dot_dimension_numbers<[1], [0], [0], [1], [0, 0, 1, 1], [], []>} : vector<16x128xbf16>, vector<128x256xbf16>, vector<16x256xf32> -> vector<16x256xf32>
    %41 = vector.extract_strided_slice %0 {offsets = [4, 0], sizes = [1, 256], strides = [1, 1]} : vector<8x256xf32> to vector<1x256xf32>
    %42 = vector.broadcast %41 : vector<1x256xf32> to vector<16x256xf32>
    %43 = arith.addf %40, %42 : vector<16x256xf32>
    %cst_23 = arith.constant 0.000000e+00 : f32
    %44 = vector.broadcast %cst_23 : f32 to vector<16x256xf32>
    %45 = arith.maximumf %43, %44 : vector<16x256xf32>
    %46 = arith.truncf %45 : vector<16x256xf32> to vector<16x256xbf16>
    %c1_24 = arith.constant 1 : index
    %c0_25 = arith.constant 0 : index
    %c0_26 = arith.constant 0 : index
    %47 = vector.load %arg3[%c1_24, %c0_25, %c0_26] : memref<3x256x256xbf16, #tpu.memory_space<vmem>>, vector<1x256x256xbf16>
    %48 = vector.shape_cast %47 : vector<1x256x256xbf16> to vector<256x256xbf16>
    %cst_27 = arith.constant dense<0.000000e+00> : vector<16x256xf32>
    %49 = tpu.matmul %46, %48, %cst_27 {dimension_numbers = #tpu.dot_dimension_numbers<[1], [0], [0], [1], [0, 0, 1, 1], [], []>} : vector<16x256xbf16>, vector<256x256xbf16>, vector<16x256xf32> -> vector<16x256xf32>
    %50 = vector.extract_strided_slice %0 {offsets = [5, 0], sizes = [1, 256], strides = [1, 1]} : vector<8x256xf32> to vector<1x256xf32>
    %51 = vector.broadcast %50 : vector<1x256xf32> to vector<16x256xf32>
    %52 = arith.addf %49, %51 : vector<16x256xf32>
    %cst_28 = arith.constant 0.000000e+00 : f32
    %53 = vector.broadcast %cst_28 : f32 to vector<16x256xf32>
    %54 = arith.maximumf %52, %53 : vector<16x256xf32>
    %55 = arith.truncf %54 : vector<16x256xf32> to vector<16x256xbf16>
    %c2_29 = arith.constant 2 : index
    %c0_30 = arith.constant 0 : index
    %c0_31 = arith.constant 0 : index
    %56 = vector.load %arg3[%c2_29, %c0_30, %c0_31] : memref<3x256x256xbf16, #tpu.memory_space<vmem>>, vector<1x256x128xbf16>
    %57 = vector.shape_cast %56 : vector<1x256x128xbf16> to vector<256x128xbf16>
    %cst_32 = arith.constant dense<0.000000e+00> : vector<16x128xf32>
    %58 = tpu.matmul %55, %57, %cst_32 {dimension_numbers = #tpu.dot_dimension_numbers<[1], [0], [0], [1], [0, 0, 1, 1], [], []>} : vector<16x256xbf16>, vector<256x128xbf16>, vector<16x128xf32> -> vector<16x128xf32>
    %59 = vector.extract_strided_slice %0 {offsets = [6, 0], sizes = [1, 128], strides = [1, 1]} : vector<8x256xf32> to vector<1x128xf32>
    %60 = vector.broadcast %59 : vector<1x128xf32> to vector<16x128xf32>
    %61 = arith.addf %58, %60 : vector<16x128xf32>
    %c0_33 = arith.constant 0 : index
    %c0_34 = arith.constant 0 : index
    %62 = vector.load %arg5[%c0_33, %c0_34] : memref<16x128xf32, #tpu.memory_space<vmem>>, vector<16x128xf32>
    tpu.vector_store %arg5[%c0_33, %c0_34], %61 {strides = array<i32>} : memref<16x128xf32, #tpu.memory_space<vmem>>, vector<16x128xf32>,
    return
  }
  func.func @transform_0(%arg0: i32) -> (i32, i32) {
    %c0_i32 = arith.constant 0 : i32
    %c0_i32_0 = arith.constant 0 : i32
    return %arg0, %c0_i32 : i32, i32
  }
  func.func @transform_1(%arg0: i32) -> (i32, i32, i32) {
    %c0_i32 = arith.constant 0 : i32
    %c0_i32_0 = arith.constant 0 : i32
    %c0_i32_1 = arith.constant 0 : i32
    %c0_i32_2 = arith.constant 0 : i32
    return %c0_i32, %c0_i32_0, %c0_i32_1 : i32, i32, i32
  }
  func.func @transform_2(%arg0: i32) -> (i32, i32, i32) {
    %c0_i32 = arith.constant 0 : i32
    %c0_i32_0 = arith.constant 0 : i32
    %c0_i32_1 = arith.constant 0 : i32
    %c0_i32_2 = arith.constant 0 : i32
    return %c0_i32, %c0_i32_0, %c0_i32_1 : i32, i32, i32
  }
  func.func @transform_3(%arg0: i32) -> (i32, i32) {
    %c0_i32 = arith.constant 0 : i32
    %c0_i32_0 = arith.constant 0 : i32
    %c0_i32_1 = arith.constant 0 : i32
    return %c0_i32, %c0_i32_0 : i32, i32
  }
  func.func @transform_4(%arg0: i32) -> (i32, i32) {
    %c0_i32 = arith.constant 0 : i32
    %c0_i32_0 = arith.constant 0 : i32
    return %arg0, %c0_i32 : i32, i32
  }
}

</mosaic_0001>

<bundles_post_ra>
// kernel: policy_forward.1
= control target key start
LH: loop header
LB: loop body
LE: loop exit
PB: predicated region body
PF: predicated region fallthrough
CT: control target
= control target key end

     0   :  { %9 = vsyncpa [#allocation3], 0  ;;  %s1589_s0 = inlined_call_operand.vmem [shape: bf16[16,128], index: 0, kind: input, shape index: {}]   ;;  %s1590_s1 = inlined_call_operand.hbm [shape: bf16[4,128,128], index: 1, kind: input, shape index: {}]   ;;  %s1591_s2 = inlined_call_operand.hbm [shape: bf16[3,256,256], index: 2, kind: input, shape index: {}]   ;;  %s1592_s3 = inlined_call_operand.hbm [shape: f32[8,256], index: 3, kind: input, shape index: {}]   ;;  %s1593_s4 = inlined_call_operand.vmem [shape: f32[16,128], index: 4, kind: output, shape index: {}]  }
   0x1   :  { %10 = vsyncpa [#allocation5], 0  ;;  %s30_s17 = sshll.u32 %s1591_s2, 4  ;;  %s1526_s18 = smov [#allocation4]   ;;  %s31_s17 = int_to_ptr.hbm [resolvable:$true] %s30_s17 }
   0x2   :  { %s32_s19 = sshll.u32 %s1526_s18, 4  ;;  %s17_s22 = sshll.u32 %s1590_s1, 4  ;;  %s33_s19 = int_to_ptr.vmem [resolvable:$true] %s32_s19  ;;  %s18_s22 = int_to_ptr.hbm [resolvable:$true] %s17_s22 }
   0x3   :  { %s1527_s23 = smov 128   ;;  %s1528_s24 = smov 8  }
   0x4   :  { %38 = dma.hbm_to_vmem [thread:$0]  %s31_s17, 12288, %s33_s19, [#allocation5], %s1527_s23, %s1527_s23, %s1528_s24  }
   0x5   :  { %s1529_s25 = smov [#allocation2]   ;;  %s1530_s27 = smov 64  }
   0x6   :  { %s19_s26 = sshll.u32 %s1529_s25, 4  ;;  %s1531_s28 = smov 4   ;;  %s20_s26 = int_to_ptr.vmem [resolvable:$true] %s19_s26 }
   0x7   :  { %25 = dma.hbm_to_vmem [thread:$0]  %s18_s22, 4096, %s20_s26, [#allocation3], %s1530_s27, %s1530_s27, %s1531_s28  }
   0x8   :  { %s44_s30 = sshll.u32 %s1592_s3, 4  ;;  %s1532_s5 = smov [#allocation6]   ;;  %s45_s30 = int_to_ptr.hbm [resolvable:$true] %s44_s30 }
   0x9   :  { %s46_s6 = sshll.u32 %s1532_s5, 4  ;;  %s47_s6 = int_to_ptr.vmem [resolvable:$true] %s46_s6 }
   0xa   :  { %49 = dma.hbm_to_vmem [thread:$0]  %s45_s30, 256, %s47_s6, [#allocation5]  }
   0xb   :  { %1522 = dma.done.wait [#allocation3], 4096  }
   0xc   :  { %1523 = vsyncadd [#allocation3], 4294963200 }
   0xd   :  { %1524 = dma.done.wait [#allocation5], 12544  }
   0xe   :  { %1525 = vsyncadd [#allocation5], 4294954752  ;;  %v1354_v0 = vld [vmem:[#allocation2 + $0x38] sm:$0xff]  ;;  %v1353_v1 = vld [vmem:[#allocation2 + $0x30] sm:$0xff] }
   0xf   :  { %137 = vmatpush.bf16.msra.mxu0 %v1354_v0  ;;  %v1362_v2 = vld [vmem:[#allocation2 + $0x78] sm:$0xff]  ;;  %v1361_v3 = vld [vmem:[#allocation2 + $0x70] sm:$0xff]  ;;  %v1352_v4 = vld [vmem:[#allocation2 + $0x28] sm:$0xff] }
  0x10   :  { %220 = vmatpush.bf16.msra.mxu1 %v1362_v2  ;;  %v1360_v5 = vld [vmem:[#allocation2 + $0x68] sm:$0xff]  ;;  %v1351_v6 = vld [vmem:[#allocation2 + $0x20] sm:$0xff]  ;;  %v1350_v8 = vld [vmem:[#allocation2 + $0x18] sm:$0xff] }
  0x11   :  { %v1359_v7 = vld [vmem:[#allocation2 + $0x60] sm:$0xff]  ;;  %v1349_v9 = vld [vmem:[#allocation2 + $0x10] sm:$0xff]  ;;  %v1348_v10 = vld [vmem:[#allocation2 + $0x8] sm:$0xff] }
  0x12   :  { %v1347_v11 = vld [vmem:[#allocation2] sm:$0xff]  ;;  %v1358_v13 = vld [vmem:[#allocation2 + $0x58] sm:$0xff]  ;;  %v1357_v14 = vld [vmem:[#allocation2 + $0x50] sm:$0xff] }
  0x13   :  { %138 = vmatpush.bf16.msra.mxu0 %v1353_v1  ;;  %v1346_v12 = vld [vmem:[%s1589_s0] sm:$0xff]  ;;  %v1356_v15 = vld [vmem:[#allocation2 + $0x48] sm:$0xff]  ;;  %v1370_v17 = vld [vmem:[#allocation2 + $0xb8] sm:$0xff] }
  0x14   :  { %221 = vmatpush.bf16.msra.mxu1 %v1361_v3  ;;  %v1355_v16 = vld [vmem:[#allocation2 + $0x40] sm:$0xff]  ;;  %303 = vmatpush.bf16.msra.mxu2 %v1370_v17  ;;  %v1369_v18 = vld [vmem:[#allocation2 + $0xb0] sm:$0xff]  ;;  %v1368_v19 = vld [vmem:[#allocation2 + $0xa8] sm:$0xff] }
  0x15   :  { %v1367_v20 = vld [vmem:[#allocation2 + $0xa0] sm:$0xff]  ;;  %v1366_v30 = vld [vmem:[#allocation2 + $0x98] sm:$0xff]  ;;  %v1365_v31 = vld [vmem:[#allocation2 + $0x90] sm:$0xff] }
  0x16   :  { %v1570_v21 = vld [vmem:[#allocation6] sm:$0xff]  ;;  %v1364_v32 = vld [vmem:[#allocation2 + $0x88] sm:$0xff]  ;;  %v1378_v34 = vld [vmem:[#allocation2 + $0xf8] sm:$0xff] }
  0x17   :  { %139 = vmatpush.bf16.msra.mxu0 %v1352_v4  ;;  %v82_v23 = vperm.slane %v1570_v21, 0  ;;  %v1363_v33 = vld [vmem:[#allocation2 + $0x80] sm:$0xff]  ;;  %386 = vmatpush.bf16.msra.mxu3 %v1378_v34  ;;  %v1377_v35 = vld [vmem:[#allocation2 + $0xf0] sm:$0xff]  ;;  %v1376_v36 = vld [vmem:[#allocation2 + $0xe8] sm:$0xff]  ;;  %v171_v39 = vperm.slane %v1570_v21, 1 }
  0x18   :  { %222 = vmatpush.bf16.msra.mxu1 %v1360_v5  ;;  %304 = vmatpush.bf16.msra.mxu2 %v1369_v18  ;;  %v1375_v37 = vld [vmem:[#allocation2 + $0xe0] sm:$0xff]  ;;  %v1374_v46 = vld [vmem:[#allocation2 + $0xd8] sm:$0xff]  ;;  %v1373_v47 = vld [vmem:[#allocation2 + $0xd0] sm:$0xff] }
  0x19   :  { %v1372_v48 = vld [vmem:[#allocation2 + $0xc8] sm:$0xff]  ;;  %v1371_v49 = vld [vmem:[#allocation2 + $0xc0] sm:$0xff]  ;;  %v1148_v50 = vld [vmem:[#allocation4 + $0x70] sm:$0xf] }
  0x1a   :  { %v1394_v51 = vld [vmem:[#allocation4 + $0x74] sm:$0xf0]  ;;  %v1393_v52 = vld [vmem:[#allocation4 + $0x74] sm:$0xf]  ;;  %v1150_v54 = vld [vmem:[#allocation4 + $0x78] sm:$0xf0] }
  0x1b   :  { %140 = vmatpush.bf16.msra.mxu0 %v1351_v6  ;;  %387 = vmatpush.bf16.msra.mxu3 %v1377_v35  ;;  %v1149_v53 = vor.u32 %v1394_v51, %v1148_v50  ;;  %v1140_v55 = vld [vmem:[#allocation4 + $0x60] sm:$0xf]  ;;  %v1392_v56 = vld [vmem:[#allocation4 + $0x64] sm:$0xf0]  ;;  %v1153_v57 = vor.u32 %v1393_v52, %v1150_v54  ;;  %v1391_v58 = vld [vmem:[#allocation4 + $0x64] sm:$0xf] }
  0x1c   :  { %223 = vmatpush.bf16.msra.mxu1 %v1359_v7  ;;  %305 = vmatpush.bf16.msra.mxu2 %v1368_v19  ;;  %v1142_v59 = vld [vmem:[#allocation4 + $0x68] sm:$0xf0]  ;;  %v1141_v60 = vor.u32 %v1392_v56, %v1140_v55  ;;  %v1132_v62 = vld [vmem:[#allocation4 + $0x50] sm:$0xf]  ;;  %v1390_v63 = vld [vmem:[#allocation4 + $0x54] sm:$0xf0] }
  0x1d   :  { %v1145_v61 = vor.u32 %v1391_v58, %v1142_v59  ;;  %v1389_v0 = vld [vmem:[#allocation4 + $0x54] sm:$0xf]  ;;  %v1134_v1 = vld [vmem:[#allocation4 + $0x58] sm:$0xf0]  ;;  %v1133_v2 = vor.u32 %v1390_v63, %v1132_v62  ;;  %v1124_v4 = vld [vmem:[#allocation4 + $0x40] sm:$0xf] }
  0x1e   :  { %v1137_v3 = vor.u32 %v1389_v0, %v1134_v1  ;;  %v1388_v5 = vld [vmem:[#allocation4 + $0x44] sm:$0xf0]  ;;  %v1387_v6 = vld [vmem:[#allocation4 + $0x44] sm:$0xf]  ;;  %v1126_v7 = vld [vmem:[#allocation4 + $0x48] sm:$0xf0] }
  0x1f   :  { %141 = vmatpush.bf16.msra.mxu0 %v1350_v8  ;;  %388 = vmatpush.bf16.msra.mxu3 %v1376_v36  ;;  %v1125_v8 = vor.u32 %v1388_v5, %v1124_v4  ;;  %v1116_v18 = vld [vmem:[#allocation4 + $0x30] sm:$0xf]  ;;  %v1386_v19 = vld [vmem:[#allocation4 + $0x34] sm:$0xf0]  ;;  %v1102_v35 = vld [vmem:[#allocation4 + $0x18] sm:$0xf0] }
  0x20   :  { %224 = vmatpush.bf16.msra.mxu1 %v1358_v13  ;;  %306 = vmatpush.bf16.msra.mxu2 %v1367_v20  ;;  %v1385_v20 = vld [vmem:[#allocation4 + $0x34] sm:$0xf]  ;;  %v1204_v54 = vld [vmem:[#allocation4 + $0x160] sm:$0xf]  ;;  %v1408_v56 = vld [vmem:[#allocation4 + $0x164] sm:$0xf0] }
  0x21   :  { %v1425_v52 = vld [vmem:[#allocation4 + $0x1f4] sm:$0xf]  ;;  %v1424_v58 = vld [vmem:[#allocation4 + $0x1e4] sm:$0xf0]  ;;  %v1205_v59 = vor.u32 %v1408_v56, %v1204_v54  ;;  %v1206_v62 = vld [vmem:[#allocation4 + $0x168] sm:$0xf0] }
  0x22   :  { %v1423_v63 = vld [vmem:[#allocation4 + $0x1e4] sm:$0xf]  ;;  %v1270_v1 = vld [vmem:[#allocation4 + $0x1e8] sm:$0xf0]  ;;  %v1260_v5 = vld [vmem:[#allocation4 + $0x1d0] sm:$0xf] }
  0x23   :  { %142 = vmatpush.bf16.msra.mxu0 %v1349_v9  ;;  %389 = vmatpush.bf16.msra.mxu3 %v1375_v37  ;;  %v1129_v9 = vor.u32 %v1387_v6, %v1126_v7  ;;  %v1092_v37 = vld [vmem:[#allocation4] sm:$0xf]  ;;  %v1273_v4 = vor.u32 %v1423_v63, %v1270_v1  ;;  %v1422_v6 = vld [vmem:[#allocation4 + $0x1d4] sm:$0xf0]  ;;  %v1405_v7 = vld [vmem:[#allocation4 + $0x154] sm:$0xf] }
  0x24   :  { %225 = vmatpush.bf16.msra.mxu1 %v1357_v14  ;;  %307 = vmatpush.bf16.msra.mxu2 %v1366_v30  ;;  %v1174_v54 = vld [vmem:[#allocation4 + $0x128] sm:$0xf0]  ;;  %v1397_v1 = vld [vmem:[#allocation4 + $0x114] sm:$0xf] }
  0x27   :  { %143 = vmatpush.bf16.msra.mxu0 %v1348_v10  ;;  %390 = vmatpush.bf16.msra.mxu3 %v1374_v46 }
  0x28   :  { %226 = vmatpush.bf16.msra.mxu1 %v1356_v15  ;;  %308 = vmatpush.bf16.msra.mxu2 %v1365_v31  ;;  %v1100_v31 = vld [vmem:[#allocation4 + $0x10] sm:$0xf] }
  0x2b   :  { %144 = vmatpush.bf16.msra.mxu0 %v1347_v11  ;;  %391 = vmatpush.bf16.msra.mxu3 %v1373_v47  ;;  %v254_v11 = vperm.slane %v1570_v21, 2  ;;  %v1426_v47 = vld [vmem:[#allocation4 + $0x1f4] sm:$0xf0] }
  0x2c   :  { %227 = vmatpush.bf16.msra.mxu1 %v1355_v16  ;;  %309 = vmatpush.bf16.msra.mxu2 %v1364_v32  ;;  %v1382_v32 = vld [vmem:[#allocation4 + $0x14] sm:$0xf0] }
  0x2d   :  { %v1101_v34 = vor.u32 %v1382_v32, %v1100_v31 }
  0x2e   :  { %145 = vmatmul.bf16.vlgmr.msra.gmra.mxu0 %v1346_v12 }
  0x2f   :  { %392 = vmatpush.bf16.msra.mxu3 %v1372_v48  ;;  %501 = vmatpush.bf16.msrb.mxu0 %v1149_v53  ;;  %v1409_v48 = vld [vmem:[#allocation4 + $0x174] sm:$0xf]  ;;  %v1278_v53 = vld [vmem:[#allocation4 + $0x1f8] sm:$0xf0] }
  0x30   :  { %310 = vmatpush.bf16.msra.mxu2 %v1363_v33  ;;  %515 = vmatpush.bf16.msrb.mxu1 %v1153_v57  ;;  %v1381_v33 = vld [vmem:[#allocation4 + $0x14] sm:$0xf]  ;;  %v1281_v55 = vor.u32 %v1425_v52, %v1278_v53  ;;  %v1268_v57 = vld [vmem:[#allocation4 + $0x1e0] sm:$0xf]  ;;  %v1416_v52 = vld [vmem:[#allocation4 + $0x1a4] sm:$0xf0] }
  0x31   :  { %v1105_v36 = vor.u32 %v1381_v33, %v1102_v35  ;;  %v1399_v53 = vld [vmem:[#allocation4 + $0x124] sm:$0xf] }
  0x32   :  { %v1177_v56 = vor.u32 %v1399_v53, %v1174_v54 }
  0x33   :  { %393 = vmatpush.bf16.msra.mxu3 %v1371_v49  ;;  %502 = vmatpush.bf16.msrb.mxu0 %v1141_v60  ;;  %v1214_v49 = vld [vmem:[#allocation4 + $0x178] sm:$0xf0]  ;;  %v1269_v60 = vor.u32 %v1424_v58, %v1268_v57  ;;  %v1415_v57 = vld [vmem:[#allocation4 + $0x1a4] sm:$0xf]  ;;  %v1238_v58 = vld [vmem:[#allocation4 + $0x1a8] sm:$0xf0] }
  0x34   :  { %516 = vmatpush.bf16.msrb.mxu1 %v1145_v61  ;;  %v1217_v51 = vor.u32 %v1409_v48, %v1214_v49  ;;  %v1407_v61 = vld [vmem:[#allocation4 + $0x164] sm:$0xf]  ;;  %v1172_v48 = vld [vmem:[#allocation4 + $0x120] sm:$0xf]  ;;  %v1400_v49 = vld [vmem:[#allocation4 + $0x124] sm:$0xf0] }
  0x35   :  { %v1209_v0 = vor.u32 %v1407_v61, %v1206_v62  ;;  %v1398_v61 = vld [vmem:[#allocation4 + $0x114] sm:$0xf0]  ;;  %v1228_v62 = vld [vmem:[#allocation4 + $0x190] sm:$0xf] }
  0x37   :  { %503 = vmatpush.bf16.msrb.mxu0 %v1133_v2  ;;  %v1196_v2 = vld [vmem:[#allocation4 + $0x150] sm:$0xf] }
  0x38   :  { %517 = vmatpush.bf16.msrb.mxu1 %v1137_v3  ;;  %v1406_v3 = vld [vmem:[#allocation4 + $0x154] sm:$0xf0] }
  0x3b   :  { %504 = vmatpush.bf16.msrb.mxu0 %v1125_v8  ;;  %v1197_v8 = vor.u32 %v1406_v3, %v1196_v2  ;;  %v1166_v2 = vld [vmem:[#allocation4 + $0x118] sm:$0xf0] }
  0x3c   :  { %518 = vmatpush.bf16.msrb.mxu1 %v1129_v9  ;;  %v1198_v9 = vld [vmem:[#allocation4 + $0x158] sm:$0xf0] }
  0xab   :  { %v146_v22 = vpop.f32.mrf.mxu0 }
  0xac   :  { %v147_v24 = vadd.f32 %v146_v22, %v82_v23  ;;  %v1117_v22 = vor.u32 %v1386_v19, %v1116_v18  ;;  %v1420_v18 = vld [vmem:[#allocation4 + $0x1c4] sm:$0xf0]  ;;  %v1403_v19 = vld [vmem:[#allocation4 + $0x144] sm:$0xf] }
  0xae   :  { %v151_v27 = vmax.f32 %v147_v24, 0.0  ;;  %505 = vmatpush.bf16.msrb.mxu0 %v1117_v22  ;;  %v1419_v22 = vld [vmem:[#allocation4 + $0x1c4] sm:$0xf] }
  0xb3   :  { %v148_v25 = vpop.f32.mrf.mxu0 }
  0xb4   :  { %v149_v26 = vadd.f32 %v148_v25, %v82_v23  ;;  %v1118_v23 = vld [vmem:[#allocation4 + $0x38] sm:$0xf0]  ;;  %v1108_v25 = vld [vmem:[#allocation4 + $0x20] sm:$0xf] }
  0xb5   :  { %v1121_v24 = vor.u32 %v1385_v20, %v1118_v23  ;;  %v1190_v20 = vld [vmem:[#allocation4 + $0x148] sm:$0xf0] }
  0xb6   :  { %v152_v28 = vmax.f32 %v149_v26, 0.0  ;;  %v1384_v26 = vld [vmem:[#allocation4 + $0x24] sm:$0xf0]  ;;  %v1254_v23 = vld [vmem:[#allocation4 + $0x1c8] sm:$0xf0] }
  0xb7   :  { %519 = vmatpush.bf16.msrb.mxu1 %v1121_v24 }
  0xb8   :  { %v153_v29 = vpack.c.bf16 %v152_v28, %v151_v27  ;;  %v1383_v27 = vld [vmem:[#allocation4 + $0x24] sm:$0xf]  ;;  %v1109_v28 = vor.u32 %v1384_v26, %v1108_v25  ;;  %v1193_v26 = vor.u32 %v1403_v19, %v1190_v20  ;;  %v1344_v20 = vld [vmem:[#allocation4 + $0x2f0] sm:$0xf] }
  0xba   :  { %228 = vmatmul.bf16.vlgmr.msra.gmra.mxu1 %v153_v29  ;;  %v1110_v29 = vld [vmem:[#allocation4 + $0x28] sm:$0xf0]  ;;  %506 = vmatpush.bf16.msrb.mxu0 %v1109_v28 }
  0xbb   :  { %v1113_v30 = vor.u32 %v1383_v27, %v1110_v29  ;;  %v1257_v27 = vor.u32 %v1419_v22, %v1254_v23  ;;  %v337_v29 = vperm.slane %v1570_v21, 3  ;;  %v1442_v22 = vld [vmem:[#allocation4 + $0x2f4] sm:$0xf0]  ;;  %v1340_v23 = vld [vmem:[#allocation4 + $0x2e0] sm:$0xf] }
  0xbd   :  { %520 = vmatpush.bf16.msrb.mxu1 %v1113_v30 }
  0xbe   :  { %507 = vmatpush.bf16.msrb.mxu0 %v1101_v34 }
  0xc1   :  { %521 = vmatpush.bf16.msrb.mxu1 %v1105_v36  ;;  %v1180_v36 = vld [vmem:[#allocation4 + $0x130] sm:$0xf] }
 0x137   :  { %v229_v38 = vpop.f32.mrf.mxu1 }
 0x138   :  { %v230_v40 = vadd.f32 %v229_v38, %v171_v39  ;;  %v1380_v38 = vld [vmem:[#allocation4 + $0x4] sm:$0xf0] }
 0x13a   :  { %v234_v43 = vmax.f32 %v230_v40, 0.0  ;;  %v1093_v40 = vor.u32 %v1380_v38, %v1092_v37  ;;  %v1402_v37 = vld [vmem:[#allocation4 + $0x134] sm:$0xf0]  ;;  %v1244_v38 = vld [vmem:[#allocation4 + $0x1b0] sm:$0xf] }
 0x13c   :  { %508 = vmatpush.bf16.msrb.mxu0 %v1093_v40  ;;  %v1418_v40 = vld [vmem:[#allocation4 + $0x1b4] sm:$0xf0] }
 0x13f   :  { %v231_v41 = vpop.f32.mrf.mxu1 }
 0x140   :  { %v232_v42 = vadd.f32 %v231_v41, %v171_v39  ;;  %v1379_v39 = vld [vmem:[#allocation4 + $0x4] sm:$0xf]  ;;  %v1094_v41 = vld [vmem:[#allocation4 + $0x8] sm:$0xf0]  ;;  %758 = vmatpush.bf16.msra.mxu0 %v1217_v51  ;;  %v1173_v51 = vor.u32 %v1400_v49, %v1172_v48 }
 0x142   :  { %v235_v44 = vmax.f32 %v232_v42, 0.0  ;;  %v1097_v42 = vor.u32 %v1379_v39, %v1094_v41  ;;  %v1181_v39 = vor.u32 %v1402_v37, %v1180_v36  ;;  %v1401_v41 = vld [vmem:[#allocation4 + $0x134] sm:$0xf]  ;;  %v1332_v36 = vld [vmem:[#allocation4 + $0x2c0] sm:$0xf] }
 0x143   :  { %v1439_v37 = vld [vmem:[#allocation4 + $0x2c4] sm:$0xf0] }
 0x144   :  { %v236_v45 = vpack.c.bf16 %v235_v44, %v234_v43  ;;  %522 = vmatpush.bf16.msrb.mxu1 %v1097_v42  ;;  %v1212_v43 = vld [vmem:[#allocation4 + $0x170] sm:$0xf]  ;;  %v1410_v44 = vld [vmem:[#allocation4 + $0x174] sm:$0xf0]  ;;  %759 = vmatpush.bf16.msra.mxu0 %v1209_v0  ;;  %v1245_v42 = vor.u32 %v1418_v40, %v1244_v38  ;;  %v1333_v38 = vor.u32 %v1439_v37, %v1332_v36  ;;  %v1576_v40 = vld [vmem:[#allocation6 + $0x8] sm:$0xff] }
 0x145   :  { %v1213_v46 = vor.u32 %v1410_v44, %v1212_v43  ;;  %v1182_v43 = vld [vmem:[#allocation4 + $0x138] sm:$0xf0]  ;;  %v1417_v44 = vld [vmem:[#allocation4 + $0x1b4] sm:$0xf]  ;;  %v1414_v0 = vld [vmem:[#allocation4 + $0x194] sm:$0xf0] }
 0x146   :  { %311 = vmatmul.bf16.vlgmr.msra.gmra.mxu2 %v236_v45  ;;  %v1276_v45 = vld [vmem:[#allocation4 + $0x1f0] sm:$0xf]  ;;  %v1229_v3 = vor.u32 %v1414_v0, %v1228_v62  ;;  %v1300_v62 = vld [vmem:[#allocation4 + $0x240] sm:$0xf] }
 0x147   :  { %v1277_v50 = vor.u32 %v1426_v47, %v1276_v45  ;;  %730 = vmatpush.bf16.msrb.mxu2 %v1213_v46  ;;  %v1185_v45 = vor.u32 %v1401_v41, %v1182_v43  ;;  %v1246_v46 = vld [vmem:[#allocation4 + $0x1b8] sm:$0xf0]  ;;  %v420_v43 = vperm.slane %v1576_v40, 4 }
 0x148   :  { %772 = vmatpush.bf16.msra.mxu1 %v1281_v55  ;;  %v1249_v47 = vor.u32 %v1417_v44, %v1246_v46 }
 0x149   :  { %744 = vmatpush.bf16.msrb.mxu3 %v1277_v50  ;;  %v1236_v50 = vld [vmem:[#allocation4 + $0x1a0] sm:$0xf] }
 0x14a   :  { %v1237_v55 = vor.u32 %v1416_v52, %v1236_v50 }
 0x14b   :  { %731 = vmatpush.bf16.msrb.mxu2 %v1205_v59  ;;  %v1241_v59 = vor.u32 %v1415_v57, %v1238_v58  ;;  %v1432_v57 = vld [vmem:[#allocation4 + $0x254] sm:$0xf0] }
 0x14c   :  { %773 = vmatpush.bf16.msra.mxu1 %v1273_v4  ;;  %v1169_v4 = vor.u32 %v1397_v1, %v1166_v2  ;;  %v1324_v1 = vld [vmem:[#allocation4 + $0x2a0] sm:$0xf]  ;;  %v1437_v2 = vld [vmem:[#allocation4 + $0x2a4] sm:$0xf0] }
 0x14d   :  { %745 = vmatpush.bf16.msrb.mxu3 %v1269_v60  ;;  %v1164_v60 = vld [vmem:[#allocation4 + $0x110] sm:$0xf] }
 0x14e   :  { %v1165_v63 = vor.u32 %v1398_v61, %v1164_v60  ;;  %v1438_v60 = vld [vmem:[#allocation4 + $0x2b4] sm:$0xf0] }
 0x14f   :  { %732 = vmatpush.bf16.msrb.mxu2 %v1197_v8  ;;  %v1156_v8 = vld [vmem:[#allocation4 + $0x100] sm:$0xf] }
 0x1c9   :  { %v312_v10 = vpop.f32.mrf.mxu2 }
 0x1ca   :  { %v313_v12 = vadd.f32 %v312_v10, %v254_v11  ;;  %v1421_v10 = vld [vmem:[#allocation4 + $0x1d4] sm:$0xf] }
 0x1cc   :  { %v317_v15 = vmax.f32 %v313_v12, 0.0  ;;  %v1261_v12 = vor.u32 %v1422_v6, %v1260_v5  ;;  %v1413_v5 = vld [vmem:[#allocation4 + $0x194] sm:$0xf]  ;;  %v1230_v6 = vld [vmem:[#allocation4 + $0x198] sm:$0xf0] }
 0x1ce   :  { %746 = vmatpush.bf16.msrb.mxu3 %v1261_v12  ;;  %v1412_v12 = vld [vmem:[#allocation4 + $0x184] sm:$0xf0] }
 0x1d1   :  { %v314_v13 = vpop.f32.mrf.mxu2 }
 0x1d2   :  { %v315_v14 = vadd.f32 %v314_v13, %v254_v11  ;;  %v1262_v11 = vld [vmem:[#allocation4 + $0x1d8] sm:$0xf0]  ;;  %v1201_v13 = vor.u32 %v1405_v7, %v1198_v9  ;;  %v1233_v7 = vor.u32 %v1413_v5, %v1230_v6  ;;  %v1396_v9 = vld [vmem:[#allocation4 + $0x104] sm:$0xf0]  ;;  %v1430_v5 = vld [vmem:[#allocation4 + $0x234] sm:$0xf0] }
 0x1d4   :  { %v318_v16 = vmax.f32 %v315_v14, 0.0  ;;  %v1188_v14 = vld [vmem:[#allocation4 + $0x140] sm:$0xf]  ;;  %760 = vmatpush.bf16.msra.mxu0 %v1201_v13  ;;  %v1395_v13 = vld [vmem:[#allocation4 + $0x104] sm:$0xf] }
 0x1d6   :  { %v319_v17 = vpack.c.bf16 %v318_v16, %v317_v15  ;;  %v1404_v15 = vld [vmem:[#allocation4 + $0x144] sm:$0xf0]  ;;  %v1252_v16 = vld [vmem:[#allocation4 + $0x1c0] sm:$0xf] }
 0x1d7   :  { %v1189_v24 = vor.u32 %v1404_v15, %v1188_v14  ;;  %v1253_v25 = vor.u32 %v1420_v18, %v1252_v16  ;;  %v1158_v14 = vld [vmem:[#allocation4 + $0x108] sm:$0xf0] }
 0x1d8   :  { %394 = vmatmul.bf16.vlgmr.msra.gmra.mxu3 %v319_v17  ;;  %v1265_v17 = vor.u32 %v1421_v10, %v1262_v11  ;;  %761 = vmatpush.bf16.msra.mxu0 %v1193_v26  ;;  %v1220_v10 = vld [vmem:[#allocation4 + $0x180] sm:$0xf]  ;;  %v1157_v11 = vor.u32 %v1396_v9, %v1156_v8  ;;  %v1161_v16 = vor.u32 %v1395_v13, %v1158_v14  ;;  %v1222_v18 = vld [vmem:[#allocation4 + $0x188] sm:$0xf0]  ;;  %v1312_v26 = vld [vmem:[#allocation4 + $0x270] sm:$0xf] }
 0x1d9   :  { %733 = vmatpush.bf16.msrb.mxu2 %v1189_v24  ;;  %747 = vmatpush.bf16.msrb.mxu3 %v1253_v25  ;;  %v1221_v15 = vor.u32 %v1412_v12, %v1220_v10  ;;  %v1345_v24 = vor.u32 %v1442_v22, %v1344_v20  ;;  %v1441_v25 = vld [vmem:[#allocation4 + $0x2e4] sm:$0xf0]  ;;  %v1436_v8 = vld [vmem:[#allocation4 + $0x294] sm:$0xf0]  ;;  %v1292_v10 = vld [vmem:[#allocation4 + $0x220] sm:$0xf] }
 0x1da   :  { %774 = vmatpush.bf16.msra.mxu1 %v1265_v17  ;;  %v1411_v17 = vld [vmem:[#allocation4 + $0x184] sm:$0xf]  ;;  %v1316_v13 = vld [vmem:[#allocation4 + $0x280] sm:$0xf]  ;;  %v1435_v14 = vld [vmem:[#allocation4 + $0x284] sm:$0xf0] }
 0x1db   :  { %v1225_v19 = vor.u32 %v1411_v17, %v1222_v18  ;;  %v1428_v17 = vld [vmem:[#allocation4 + $0x214] sm:$0xf0]  ;;  %v1427_v20 = vld [vmem:[#allocation4 + $0x204] sm:$0xf0] }
 0x1dc   :  { %762 = vmatpush.bf16.msra.mxu0 %v1185_v45 }
 0x1dd   :  { %734 = vmatpush.bf16.msrb.mxu2 %v1181_v39  ;;  %748 = vmatpush.bf16.msrb.mxu3 %v1245_v42  ;;  %v419_v42 = vperm.slane %v1570_v21, 4 }
 0x1de   :  { %775 = vmatpush.bf16.msra.mxu1 %v1257_v27  ;;  %v1434_v27 = vld [vmem:[#allocation4 + $0x274] sm:$0xf0] }
 0x1e0   :  { %763 = vmatpush.bf16.msra.mxu0 %v1177_v56  ;;  %v1304_v56 = vld [vmem:[#allocation4 + $0x250] sm:$0xf] }
 0x1e1   :  { %735 = vmatpush.bf16.msrb.mxu2 %v1173_v51  ;;  %749 = vmatpush.bf16.msrb.mxu3 %v1237_v55  ;;  %v1305_v58 = vor.u32 %v1432_v57, %v1304_v56 }
 0x1e2   :  { %776 = vmatpush.bf16.msra.mxu1 %v1249_v47 }
 0x1e4   :  { %764 = vmatpush.bf16.msra.mxu0 %v1169_v4  ;;  %v1296_v4 = vld [vmem:[#allocation4 + $0x230] sm:$0xf] }
 0x1e5   :  { %736 = vmatpush.bf16.msrb.mxu2 %v1165_v63  ;;  %750 = vmatpush.bf16.msrb.mxu3 %v1229_v3  ;;  %v1431_v63 = vld [vmem:[#allocation4 + $0x244] sm:$0xf0]  ;;  %v1325_v3 = vor.u32 %v1437_v2, %v1324_v1  ;;  %v1297_v6 = vor.u32 %v1430_v5, %v1296_v4 }
 0x1e6   :  { %777 = vmatpush.bf16.msra.mxu1 %v1241_v59  ;;  %v1328_v59 = vld [vmem:[#allocation4 + $0x2b0] sm:$0xf]  ;;  %v1301_v0 = vor.u32 %v1431_v63, %v1300_v62 }
 0x1e7   :  { %v1329_v61 = vor.u32 %v1438_v60, %v1328_v59 }
 0x1e8   :  { %765 = vmatpush.bf16.msra.mxu0 %v1161_v16  ;;  %v1288_v16 = vld [vmem:[#allocation4 + $0x210] sm:$0xf] }
 0x1e9   :  { %737 = vmatpush.bf16.msrb.mxu2 %v1157_v11  ;;  %751 = vmatpush.bf16.msrb.mxu3 %v1221_v15  ;;  %v1429_v11 = vld [vmem:[#allocation4 + $0x224] sm:$0xf0]  ;;  %v1317_v15 = vor.u32 %v1435_v14, %v1316_v13  ;;  %v1289_v18 = vor.u32 %v1428_v17, %v1288_v16 }
 0x1ea   :  { %778 = vmatpush.bf16.msra.mxu1 %v1233_v7  ;;  %v1320_v7 = vld [vmem:[#allocation4 + $0x290] sm:$0xf]  ;;  %v1293_v12 = vor.u32 %v1429_v11, %v1292_v10 }
 0x1eb   :  { %v1321_v9 = vor.u32 %v1436_v8, %v1320_v7 }
 0x1ed   :  { %936 = vmatpush.bf16.msra.mxu3 %v1345_v24 }
 0x1ee   :  { %779 = vmatpush.bf16.msra.mxu1 %v1225_v19  ;;  %v1284_v19 = vld [vmem:[#allocation4 + $0x200] sm:$0xf] }
 0x1ef   :  { %v1285_v22 = vor.u32 %v1427_v20, %v1284_v19 }
 0x25b   :  { %v395_v28 = vpop.f32.mrf.mxu3 }
 0x25c   :  { %v396_v30 = vadd.f32 %v395_v28, %v337_v29  ;;  %v1313_v28 = vor.u32 %v1434_v27, %v1312_v26 }
 0x25e   :  { %v400_v33 = vmax.f32 %v396_v30, 0.0  ;;  %v1341_v30 = vor.u32 %v1441_v25, %v1340_v23  ;;  %922 = vmatpush.bf16.msra.mxu2 %v1313_v28  ;;  %v569_v25 = vperm.slane %v1576_v40, 5 }
 0x260   :  { %937 = vmatpush.bf16.msra.mxu3 %v1341_v30 }
 0x263   :  { %v397_v31 = vpop.f32.mrf.mxu3 }
 0x264   :  { %v398_v32 = vadd.f32 %v397_v31, %v337_v29  ;;  %v1308_v29 = vld [vmem:[#allocation4 + $0x260] sm:$0xf]  ;;  %v1433_v31 = vld [vmem:[#allocation4 + $0x264] sm:$0xf0] }
 0x266   :  { %v401_v34 = vmax.f32 %v398_v32, 0.0  ;;  %v1336_v32 = vld [vmem:[#allocation4 + $0x2d0] sm:$0xf] }
 0x268   :  { %v402_v35 = vpack.c.bf16 %v401_v34, %v400_v33  ;;  %v1440_v33 = vld [vmem:[#allocation4 + $0x2d4] sm:$0xf0]  ;;  %v1309_v34 = vor.u32 %v1433_v31, %v1308_v29  ;;  %v568_v29 = vperm.slane %v1570_v21, 5 }
 0x26a   :  { %509 = vmatmul.bf16.vlgmr.msrb.gmra.mxu0 %v402_v35  ;;  %523 = vmatmul.bf16.vlgmr.msrb.gmra.mxu1 %v402_v35  ;;  %v1337_v35 = vor.u32 %v1440_v33, %v1336_v32 }
 0x26b   :  { %923 = vmatpush.bf16.msra.mxu2 %v1309_v34 }
 0x26c   :  { %938 = vmatpush.bf16.msra.mxu3 %v1337_v35 }
 0x26f   :  { %924 = vmatpush.bf16.msra.mxu2 %v1305_v58 }
 0x270   :  { %939 = vmatpush.bf16.msra.mxu3 %v1333_v38 }
 0x273   :  { %925 = vmatpush.bf16.msra.mxu2 %v1301_v0 }
 0x274   :  { %940 = vmatpush.bf16.msra.mxu3 %v1329_v61 }
 0x277   :  { %926 = vmatpush.bf16.msra.mxu2 %v1297_v6 }
 0x278   :  { %941 = vmatpush.bf16.msra.mxu3 %v1325_v3 }
 0x27b   :  { %927 = vmatpush.bf16.msra.mxu2 %v1293_v12 }
 0x27c   :  { %942 = vmatpush.bf16.msra.mxu3 %v1321_v9 }
 0x27f   :  { %928 = vmatpush.bf16.msra.mxu2 %v1289_v18 }
 0x280   :  { %943 = vmatpush.bf16.msra.mxu3 %v1317_v15 }
 0x283   :  { %929 = vmatpush.bf16.msra.mxu2 %v1285_v22 }
 0x2e7   :  { %v510_v39 = vpop.f32.mrf.mxu0  ;;  %v524_v41 = vpop.f32.mrf.mxu1 }
 0x2e8   :  { %v511_v44 = vadd.f32 %v510_v39, %v419_v42  ;;  %v525_v45 = vadd.f32 %v524_v41, %v420_v43 }
 0x2ea   :  { %v529_v50 = vmax.f32 %v511_v44, 0.0  ;;  %v530_v51 = vmax.f32 %v525_v45, 0.0 }
 0x2ef   :  { %v512_v46 = vpop.f32.mrf.mxu0  ;;  %v526_v47 = vpop.f32.mrf.mxu1 }
 0x2f0   :  { %v513_v48 = vadd.f32 %v512_v46, %v419_v42  ;;  %v527_v49 = vadd.f32 %v526_v47, %v420_v43  ;;  %v825_v47 = vperm.slane %v1570_v21, 6 }
 0x2f2   :  { %v531_v52 = vmax.f32 %v513_v48, 0.0  ;;  %v532_v53 = vmax.f32 %v527_v49, 0.0 }
 0x2f4   :  { %v533_v54 = vpack.c.bf16 %v531_v52, %v529_v50  ;;  %v534_v55 = vpack.c.bf16 %v532_v53, %v530_v51 }
 0x2f6   :  { %738 = vmatmul.bf16.vlgmr.msrb.gmra.mxu2 %v533_v54  ;;  %752 = vmatmul.bf16.vlgmr.msrb.gmra.mxu3 %v534_v55 }
 0x2f7   :  { %766 = vmatmul.bf16.vlgmr.msra.gmra.mxu0 %v533_v54  ;;  %780 = vmatmul.bf16.vlgmr.msra.gmra.mxu1 %v534_v55 }
 0x374   :  { %v767_v23 = vpop.f32.mrf.mxu0  ;;  %v781_v24 = vpop.f32.mrf.mxu1 }
 0x375   :  { %v768_v26 = vadd.f32 %v767_v23, %v569_v25 }
 0x377   :  { %v782_v31 = vadd.f32 %v781_v24, %v768_v26 }
 0x379   :  { %v739_v27 = vpop.f32.mrf.mxu2  ;;  %v753_v28 = vpop.f32.mrf.mxu3  ;;  %v787_v36 = vmax.f32 %v782_v31, 0.0 }
 0x37a   :  { %v740_v33 = vadd.f32 %v739_v27, %v568_v29 }
 0x37c   :  { %v769_v30 = vpop.f32.mrf.mxu0  ;;  %v783_v34 = vpop.f32.mrf.mxu1  ;;  %v754_v39 = vadd.f32 %v753_v28, %v740_v33 }
 0x37d   :  { %v770_v32 = vadd.f32 %v769_v30, %v569_v25 }
 0x37e   :  { %v786_v40 = vmax.f32 %v754_v39, 0.0 }
 0x37f   :  { %v784_v35 = vadd.f32 %v783_v34, %v770_v32 }
 0x381   :  { %v789_v37 = vmax.f32 %v784_v35, 0.0  ;;  %v741_v38 = vpop.f32.mrf.mxu2  ;;  %v755_v43 = vpop.f32.mrf.mxu3 }
 0x382   :  { %v742_v41 = vadd.f32 %v741_v38, %v568_v29 }
 0x383   :  { %v791_v42 = vpack.c.bf16 %v789_v37, %v787_v36 }
 0x384   :  { %v756_v44 = vadd.f32 %v755_v43, %v742_v41 }
 0x385   :  { %944 = vmatmul.bf16.vlgmr.msra.gmra.mxu3 %v791_v42 }
 0x386   :  { %v788_v45 = vmax.f32 %v756_v44, 0.0 }
 0x388   :  { %v790_v46 = vpack.c.bf16 %v788_v45, %v786_v40 }
 0x38a   :  { %930 = vmatmul.bf16.vlgmr.msra.gmra.mxu2 %v790_v46 }
 0x408   :  { %v945_v48 = vpop.f32.mrf.mxu3 }
 0x40d   :  { %v931_v49 = vpop.f32.mrf.mxu2 }
 0x40e   :  { %v932_v50 = vadd.f32 %v931_v49, %v825_v47 }
 0x410   :  { %v946_v51 = vadd.f32 %v945_v48, %v932_v50  ;;  %v947_v54 = vpop.f32.mrf.mxu3 }
 0x412   :  { %950 = vst [vmem:[%s1593_s4] sm:$0xff] %v946_v51 }
 0x415   :  { %v933_v52 = vpop.f32.mrf.mxu2 }
 0x416   :  { %v934_v53 = vadd.f32 %v933_v52, %v825_v47 }
 0x418   :  { %v948_v55 = vadd.f32 %v947_v54, %v934_v53 }
 0x41a   :  { %951 = vst [vmem:[%s1593_s4 + $0x8] sm:$0xff] %v948_v55 }
 0x41b   :  { %956 = vsyncpa [#allocation3], 1 }
 0x41c   :  { %957 = vsyncpa [#allocation5], 1 }

</bundles_post_ra>
